<compile_context>
chip_gen: v7x
topology: tpu7x:2x2x1
jax: 0.10.0
libtpu: 0.0.40
codegen_flags: <defaults>
</compile_context>

<pallas_src>
import functools

import numpy as np
import jax
import jax.numpy as jnp
from jax.experimental import pallas as pl
from jax.experimental.pallas import tpu as pltpu


_K = 5        # conv kernel size
_IB = 128     # interpolation block (lanes)


# ----------------------------------------------------------------------------
# Runtime probe: pltpu.roll shift convention (jnp.roll-like or reversed)
# ----------------------------------------------------------------------------

@functools.lru_cache(maxsize=None)
def _roll_sign():
    def kern(x_ref, o_ref):
        o_ref[...] = pltpu.roll(x_ref[...], 1, axis=1)

    x = jnp.tile(jnp.arange(128, dtype=jnp.float32)[None, :], (8, 1))
    y = pl.pallas_call(kern, out_shape=jax.ShapeDtypeStruct((8, 128), jnp.float32))(x)
    v = int(jax.device_get(y[0, 1]))
    if v == 0:
        return 1      # out[i] = in[i - shift]  (jnp.roll convention)
    if v == 2:
        return -1     # out[i] = in[i + shift]
    raise RuntimeError(f"unexpected pltpu.roll semantics (probe value {v})")


# ----------------------------------------------------------------------------
# In-kernel helpers (operate on VMEM-resident values)
# ----------------------------------------------------------------------------

def _flip_lanes(a, flip_mat):
    """Reverse a narrow (C, w) slab along lanes (reflect-padding helper)."""
    w = a.shape[-1]
    if w == 1:
        return a
    if w == 2:
        return jnp.concatenate([a[:, 1:2], a[:, 0:1]], axis=1)
    return jnp.dot(a, flip_mat, preferred_element_type=jnp.float32)


def _conv5(x, w_ref, bias, dil, flip_mat, roll_sign):
    """K=5 dilated conv with PyTorch 'reflect' padding as a single MXU dot.

    x:      (Cin, L) f32 activation, L % 128 == 0
    w_ref:  (Cout, 5*Cin) bf16 weight ref (BatchNorm scale pre-folded)
    bias:   (Cout, 1) f32 folded BN shift (or conv bias)

    Taps are built by circularly rolling an aligned buffer [x | rpad | fill | lpad]
    so the wrap-around of each roll lands exactly on the reflected edge values.
    """
    cin, L = x.shape
    p = 2 * dil
    lpad = _flip_lanes(x[:, 1:p + 1], flip_mat)            # x[p], ..., x[1]
    rpad = _flip_lanes(x[:, L - 1 - p:L - 1], flip_mat)    # x[L-2], ..., x[L-1-p]
    fillw = (-2 * p) % 128
    parts = [x, rpad]
    if fillw:
        parts.append(jnp.zeros((cin, fillw), x.dtype))
    parts.append(lpad)                                      # lpad sits at the buffer end
    xbuf = jnp.concatenate(parts, axis=1)                   # (Cin, L + 2p + fill), 128-mult
    width = xbuf.shape[-1]
    taps = []
    for t in range(_K):
        s = (roll_sign * (p - t * dil)) % width             # XLU lane rotation
        xr = xbuf if s == 0 else pltpu.roll(xbuf, s, axis=1)
        taps.append(xr[:, :L])
    taps = jnp.concatenate(taps, axis=0).astype(jnp.bfloat16)   # (5*Cin, L)
    y = jnp.dot(w_ref[...], taps, preferred_element_type=jnp.float32)
    return y + bias


def _upsample2(x, mhalo):
    """F.interpolate(scale_factor=2, mode='linear', align_corners=False) along lanes.

    One (nblk*C, 130) x (130, 256) MXU dot: the 0.75/0.25 blend and the edge clamp
    are baked into `mhalo`; the L/128 blocks are batched along sublanes so small-C
    layers still fill the MXU rows.
    """
    C, L = x.shape
    xext = jnp.concatenate([x[:, :1], x, x[:, L - 1:]], axis=1)          # (C, L+2)
    nblk = L // _IB
    if nblk == 1:
        slabs = xext
    else:
        slabs = jnp.concatenate(
            [xext[:, b * _IB: b * _IB + _IB + 2] for b in range(nblk)], axis=0)
    y = jnp.dot(slabs.astype(jnp.bfloat16), mhalo,
                preferred_element_type=jnp.float32)                      # (nblk*C, 256)
    if nblk == 1:
        return y
    return jnp.concatenate([y[b * C:(b + 1) * C] for b in range(nblk)], axis=1)


# ----------------------------------------------------------------------------
# Fused kernel: both heads, all layers, nb samples per grid step
# ----------------------------------------------------------------------------

def _eqnet_kernel(feat_ref, mhalo_ref, shifts_ref, *refs, nb, dil_p, dil_e,
                  flip_widths, split0, n_phase, n_event, roll_sign):
    nflip = len(flip_widths)
    nh_p, nh_e = len(dil_p) - 1, len(dil_e) - 1
    nw = 1 + nh_p + nh_e
    flip_refs = refs[:nflip]
    w_refs = refs[nflip:nflip + nw]
    phase_out_ref, event_out_ref = refs[nflip + nw], refs[nflip + nw + 1]

    flips = {w: flip_refs[i][...] for i, w in enumerate(flip_widths)}
    mhalo = mhalo_ref[...]
    shifts = shifts_ref[...]

    def conv(x, li, d):
        w_ref = w_refs[li]
        rows = w_ref.shape[0]
        return _conv5(x, w_ref, shifts[0:rows, li:li + 1], d,
                      flips.get(2 * d), roll_sign)

    for s in range(nb):
        x0 = feat_ref[s]                                         # (Cin0, nt) f32

        # fused first conv of both heads (shared input + dilation)
        y0 = jnp.maximum(conv(x0, 0, dil_p[0]), 0.0)             # (128, nt)
        xp, xe = y0[:split0], y0[split0:]

        # ---- phase picker: interp after every hidden conv ----
        xp = _upsample2(xp, mhalo)
        for i in range(1, nh_p):
            xp = _upsample2(jnp.maximum(conv(xp, i, dil_p[i]), 0.0), mhalo)
        xp = _upsample2(conv(xp, nh_p, dil_p[nh_p]), mhalo)       # (8, 32*nt)
        phase_out_ref[s] = xp[:n_phase].astype(phase_out_ref.dtype)

        # ---- event detector: interp only after conv_out ----
        for i in range(1, nh_e):
            xe = jnp.maximum(conv(xe, nh_p + i, dil_e[i]), 0.0)
        xe = _upsample2(conv(xe, nh_p + nh_e, dil_e[nh_e]), mhalo)  # (8, 2*nt)
        event_out_ref[s] = xe[:n_event].astype(event_out_ref.dtype)


# ----------------------------------------------------------------------------
# Host-side parameter prep (BN fold, fused layer 0, packed shifts, constants)
# ----------------------------------------------------------------------------

def _flip_matrix_np(w):
    m = np.zeros((w, w), np.float32)
    m[np.arange(w), w - 1 - np.arange(w)] = 1.0
    return m


def _interp_halo_matrix(B=_IB):
    # y2[2i] = 0.25*x[i-1] + 0.75*x[i];  y2[2i+1] = 0.75*x[i] + 0.25*x[i+1]
    m = np.zeros((B + 2, 2 * B), np.float32)
    q = np.arange(B)
    m[q, 2 * q] = 0.25
    m[q + 1, 2 * q] = 0.75
    m[q + 1, 2 * q + 1] = 0.75
    m[q + 2, 2 * q + 1] = 0.25
    return m


def _fold_weight(w, scale, pad_rows=None):
    """(K, Cout, Cin) conv weight + (Cout, 1) BN scale -> (rows, K*Cin) bf16."""
    K, cout, cin = w.shape
    wm = jnp.transpose(w, (1, 0, 2)).reshape(cout, K * cin) * scale
    if pad_rows is not None and pad_rows > cout:
        wm = jnp.concatenate(
            [wm, jnp.zeros((pad_rows - cout, K * cin), wm.dtype)], axis=0)
    return wm.astype(jnp.bfloat16)


def _prepare(params):
    ph, ev = params["phase"], params["event"]
    dil_p = tuple(l["dilation"] for l in ph["layers"]) + (ph["dil_out"],)
    dil_e = tuple(l["dilation"] for l in ev["layers"]) + (ev["dil_out"],)
    assert dil_p[0] == dil_e[0], "fused first conv requires matching dilation"

    # fused first layer: phase rows on top, event rows below
    w0 = jnp.concatenate(
        [_fold_weight(ph["layers"][0]["w"], ph["layers"][0]["scale"]),
         _fold_weight(ev["layers"][0]["w"], ev["layers"][0]["scale"])], axis=0)
    weights = [w0]
    shift_cols = [jnp.concatenate([ph["layers"][0]["shift"],
                                   ev["layers"][0]["shift"]], axis=0)]
    for head in (ph, ev):
        for layer in head["layers"][1:]:
            weights.append(_fold_weight(layer["w"], layer["scale"]))
            shift_cols.append(layer["shift"])
        n_out = head["w_out"].shape[1]
        pad_rows = ((n_out + 7) // 8) * 8          # pad out-conv rows to a sublane multiple
        weights.append(_fold_weight(head["w_out"], head["scale_out"], pad_rows=pad_rows))
        shift_cols.append(head["shift_out"])

    srows = max(int(c.shape[0]) for c in shift_cols)
    srows = ((srows + 7) // 8) * 8
    shifts = jnp.concatenate(
        [jnp.pad(jnp.asarray(c, jnp.float32), ((0, srows - c.shape[0]), (0, 0)))
         for c in shift_cols], axis=1)             # (srows, n_layers) packed shifts

    widths = tuple(sorted({2 * d for d in dil_p + dil_e if 2 * d > 2}))
    flips = [jnp.asarray(_flip_matrix_np(w)) for w in widths]
    mhalo = jnp.asarray(_interp_halo_matrix()).astype(jnp.bfloat16)

    return dict(weights=weights, shifts=shifts, flips=flips, flip_widths=widths,
                mhalo=mhalo, dil_p=dil_p, dil_e=dil_e,
                split0=int(ph["layers"][0]["w"].shape[1]),
                n_phase=int(ph["w_out"].shape[1]),
                n_event=int(ev["w_out"].shape[1]))


def _const_spec(arr):
    nd = arr.ndim
    return pl.BlockSpec(arr.shape, lambda n, _nd=nd: (0,) * _nd)


def eqnet_forward(batched_inputs, params):
    feat = batched_inputs["data"]                 # backbone feature map [bt, st, 128, nt]
    bt, st, ch, nt = feat.shape
    assert nt % 128 == 0 and nt >= 128, "time axis must be a lane-dense multiple of 128"
    N = bt * st
    nb = 2 if N % 2 == 0 else 1                   # samples per grid step
    x = feat.reshape(N, ch, nt).astype(jnp.float32)

    prep = _prepare(params)
    dil_p, dil_e = prep["dil_p"], prep["dil_e"]
    assert 2 * max(dil_p + dil_e) <= nt - 2, "reflect padding needs pad < time length"
    nh_p, nh_e = len(dil_p) - 1, len(dil_e) - 1
    nt_phase = nt << (nh_p + 1)
    nt_event = nt << 1

    ops = [prep["mhalo"], prep["shifts"]] + prep["flips"] + prep["weights"]
    in_specs = ([pl.BlockSpec((nb, ch, nt), lambda n: (n, 0, 0))] +
                [_const_spec(a) for a in ops])
    out_specs = (pl.BlockSpec((nb, prep["n_phase"], nt_phase), lambda n: (n, 0, 0)),
                 pl.BlockSpec((nb, prep["n_event"], nt_event), lambda n: (n, 0, 0)))
    out_shape = (jax.ShapeDtypeStruct((N, prep["n_phase"], nt_phase), jnp.float32),
                 jax.ShapeDtypeStruct((N, prep["n_event"], nt_event), jnp.float32))

    kern = functools.partial(
        _eqnet_kernel, nb=nb, dil_p=dil_p, dil_e=dil_e,
        flip_widths=prep["flip_widths"], split0=prep["split0"],
        n_phase=prep["n_phase"], n_event=prep["n_event"], roll_sign=_roll_sign())

    phase, event = pl.pallas_call(
        kern,
        grid=(N // nb,),
        in_specs=in_specs,
        out_specs=out_specs,
        out_shape=out_shape,
        compiler_params=pltpu.CompilerParams(
            dimension_semantics=("parallel",),           # megacore split on v7x
            vmem_limit_bytes=32 * 1024 * 1024),
    )(x, *ops)

    phase = jnp.transpose(phase.reshape(bt, st, prep["n_phase"], nt_phase), (0, 2, 3, 1))
    event = jnp.transpose(event.reshape(bt, st, nt_event), (0, 2, 1))
    return {"phase": phase, "event": event}


# ----------------------------------------------------------------------------
# Deterministic parameter init (BN running stats folded into per-channel affine)
# ----------------------------------------------------------------------------

def init_params(key, channels=(128, 64, 32, 16, 8), dilations=(1, 2, 4, 8, 16), K=5):
    params = {}
    for head, out_ch in (("phase", 3), ("event", 1)):
        layers = []
        for i in range(len(channels) - 1):
            key, k1, k2, k3, k4, k5 = jax.random.split(key, 6)
            cin, cout = channels[i], channels[i + 1]
            w = jax.random.normal(k1, (K, cout, cin), jnp.float32) / jnp.sqrt(cin * K)
            gamma = 1.0 + 0.1 * jax.random.normal(k2, (cout,), jnp.float32)
            beta = 0.1 * jax.random.normal(k3, (cout,), jnp.float32)
            mean = 0.1 * jax.random.normal(k4, (cout,), jnp.float32)
            var = jax.random.uniform(k5, (cout,), jnp.float32, 0.5, 1.5)
            scale = gamma / jnp.sqrt(var + 1e-5)          # BatchNorm1d eval fold
            shift = beta - mean * scale
            layers.append(dict(w=w, scale=scale.reshape(cout, 1),
                               shift=shift.reshape(cout, 1), dilation=dilations[i]))
        key, k1, k2 = jax.random.split(key, 3)
        cin = channels[-1]
        w_out = jax.random.normal(k1, (K, out_ch, cin), jnp.float32) / jnp.sqrt(cin * K)
        b_out = 0.1 * jax.random.normal(k2, (out_ch,), jnp.float32)
        params[head] = dict(layers=layers, w_out=w_out,
                            scale_out=jnp.ones((out_ch, 1), jnp.float32),
                            shift_out=b_out.reshape(out_ch, 1),
                            dil_out=dilations[-1])
    return params


# ----------------------------------------------------------------------------
# Pure-JAX reference (independent conv / interp path) for validation
# ----------------------------------------------------------------------------

def _ref_conv(x, w, scale, shift, dilation, relu):
    K, Cout, Cin = w.shape
    pad = ((K - 1) * dilation + 1) // 2
    xp = jnp.pad(x, ((0, 0), (0, 0), (pad, pad)), mode="reflect")
    w_oik = jnp.transpose(w, (1, 2, 0))
    y = jax.lax.conv_general_dilated(
        xp, w_oik, window_strides=(1,), padding="VALID",
        rhs_dilation=(dilation,), dimension_numbers=("NCH", "OIH", "NCH"),
        precision=jax.lax.Precision.HIGHEST)
    y = y * scale[None, :, :] + shift[None, :, :]
    return jnp.maximum(y, 0.0) if relu else y


def _ref_interp2x(x):
    left = jnp.concatenate([x[..., :1], x[..., :-1]], axis=-1)
    right = jnp.concatenate([x[..., 1:], x[..., -1:]], axis=-1)
    even = 0.25 * left + 0.75 * x
    odd = 0.75 * x + 0.25 * right
    return jnp.stack([even, odd], axis=-1).reshape(*x.shape[:-1], 2 * x.shape[-1])


def ref_eqnet_forward(batched_inputs, params):
    feat = batched_inputs["data"]
    bt, st, ch, nt = feat.shape

    def head(p, interp_hidden):
        x = feat.reshape(bt * st, ch, nt)
        for layer in p["layers"]:
            x = _ref_conv(x, layer["w"], layer["scale"], layer["shift"],
                          layer["dilation"], True)
            if interp_hidden:
                x = _ref_interp2x(x)
        x = _ref_conv(x, p["w_out"], p["scale_out"], p["shift_out"],
                      p["dil_out"], False)
        return _ref_interp2x(x)

    xp_ = head(params["phase"], True)
    xp_ = jnp.transpose(xp_.reshape(bt, st, xp_.shape[1], xp_.shape[2]), (0, 2, 3, 1))
    xe = head(params["event"], False)
    xe = jnp.transpose(xe.reshape(bt, st, xe.shape[2]), (0, 2, 1))
    return {"phase": xp_, "event": xe}


# ----------------------------------------------------------------------------

if __name__ == "__main__":
    key = jax.random.PRNGKey(0)
    kp, kd = jax.random.split(key)
    params = init_params(kp)

    # ch is fixed at 128 by the head configs; nt a multiple of 128 keeps the
    # time/lane dimension lane-dense at every layer of both heads.
    bt, st, ch, nt = 2, 2, 128, 128
    feat = jax.random.normal(kd, (bt, st, ch, nt), jnp.float32)
    batched_inputs = {"data": feat}

    out = jax.block_until_ready(eqnet_forward(batched_inputs, params))

    assert out["phase"].shape == (bt, 3, 32 * nt, st), out["phase"].shape
    assert out["event"].shape == (bt, 2 * nt, st), out["event"].shape

    ref = jax.block_until_ready(ref_eqnet_forward(batched_inputs, params))
    for name in ("phase", "event"):
        err = float(jnp.max(jnp.abs(out[name] - ref[name])))
        # bf16 MXU operands (f32 accumulation) vs an all-f32 reference
        tol = 3e-2 * max(float(jnp.max(jnp.abs(ref[name]))), 1.0)
        assert err <= tol, (name, err, tol)

    print("KERNEL_OK")
</pallas_src>

<mosaic_0001>
module attributes {stable_mosaic.version = 11 : i64} {
  func.func @kern(%arg0: memref<8x128xf32, #tpu.memory_space<vmem>>, %arg1: memref<8x128xf32, #tpu.memory_space<vmem>>) attributes {dimension_semantics = [], scalar_prefetch = 0 : i64, scratch_operands = 0 : i64, tpu.core_type = #tpu.core_type<tc>} {
    %c0 = arith.constant 0 : index
    %c0_0 = arith.constant 0 : index
    %0 = vector.load %arg0[%c0, %c0_0] : memref<8x128xf32, #tpu.memory_space<vmem>>, vector<8x128xf32>
    %c1_i32 = arith.constant 1 : i32
    %1 = tpu.dynamic_rotate %0 by %c1_i32 dim 1 : vector<8x128xf32>, i32 -> vector<8x128xf32>
    %c0_1 = arith.constant 0 : index
    %c0_2 = arith.constant 0 : index
    %2 = vector.load %arg1[%c0_1, %c0_2] : memref<8x128xf32, #tpu.memory_space<vmem>>, vector<8x128xf32>
    tpu.vector_store %arg1[%c0_1, %c0_2], %1 {strides = array<i32>} : memref<8x128xf32, #tpu.memory_space<vmem>>, vector<8x128xf32>,
    return
  }
}

</mosaic_0001>

<bundles_post_ra>
// kernel: tpu_custom_call.1
= control target key start
LH: loop header
LB: loop body
LE: loop exit
PB: predicated region body
PF: predicated region fallthrough
CT: control target
= control target key end

     0   :  { %6 = vsyncpa [#allocation3], 0  ;;  %s128_s0 = inlined_call_operand.hbm [shape: f32[8,128], index: 0, kind: input, shape index: {}]   ;;  %s129_s1 = inlined_call_operand.hbm [shape: f32[8,128], index: 1, kind: output, shape index: {}]  }
   0x1   :  { %7 = vsyncpa [#allocation4], 0  ;;  %s91_s6 = smov [#allocation2]   ;;  %s43_s10 = scalar_lea.hbm %s128_s0, 128 }
   0x2   :  { %s14_s7 = sshll.u32 %s91_s6, 4  ;;  %p44_p0 = scmp.ne.s32.totalorder %s128_s0, %s43_s10  ;;  %s15_s7 = int_to_ptr.vmem [resolvable:$true] %s14_s7 }
   0x3   :  { %p47_p1 = scmp.lt.u32.totalorder %s43_s10, %s128_s0 }
   0x5   :  { %p49_p2 = pnand %p47_p1, %p44_p0 }
   0x7   :  { %52 = shalt.err (!%p49_p2)
}
   0x8   :  { %s53_s15 = scalar_lea.vmem %s15_s7, 128  ;;  %p58_p4 = scmp.lt.s32.totalorder %s15_s7, %s15_s7 }
   0x9   :  { %p54_p3 = scmp.ne.s32.totalorder %s15_s7, %s53_s15  ;;  %p59_p5 = scmp.lt.s32.totalorder %s53_s15, %s53_s15 }
   0xb   :  { %p60_p6 = por %p59_p5, %p58_p4 }
   0xd   :  { %p61_p7 = pnand %p60_p6, %p54_p3 }
   0xf   :  { %64 = shalt.err (!%p61_p7)
}
  0x10   :  { %17 = dma.hbm_to_vmem [thread:$0]  %s128_s0, 128, %s15_s7, [#allocation3]  }
  0x11   :  { %87 = dma.done.wait [#allocation3], 128  }
  0x12   :  { %88 = vsyncadd [#allocation3], 4294967168  ;;  %v21_v0 = vld [vmem:[#allocation2] sm:$0xff]  ;;  %s92_s18 = smov 1   ;;  %s93_s19 = smov [#allocation5]  }
  0x13   :  { %22 = vrot.lane.b32.xlu0 %v21_v0, %s92_s18  ;;  %s31_s20 = sshll.u32 %s93_s19, 4  ;;  %s32_s20 = int_to_ptr.vmem [resolvable:$true] %s31_s20 }
  0x14   :  { %s65_s21 = scalar_lea.vmem %s32_s20, 128  ;;  %p70_p9 = scmp.lt.s32.totalorder %s32_s20, %s32_s20 }
  0x15   :  { %p66_p8 = scmp.ne.s32.totalorder %s32_s20, %s65_s21  ;;  %p71_p10 = scmp.lt.s32.totalorder %s65_s21, %s65_s21 }
  0x17   :  { %p72_p11 = por %p71_p10, %p70_p9 }
  0x19   :  { %p73_p12 = pnand %p72_p11, %p66_p8 }
  0x85   :  { %v23_v1 = vpop.permute.xlu0 %22 }
  0x86   :  { %24 = vst [vmem:[#allocation5] sm:$0xff] %v23_v1 }
  0x87   :  { %76 = shalt.err (!%p73_p12)
}
  0x88   :  { %s77_s0 = scalar_lea.hbm %s129_s1, 128 }
  0x89   :  { %p78_p13 = scmp.ne.s32.totalorder %s129_s1, %s77_s0  ;;  %p81_p0 = scmp.lt.u32.totalorder %s77_s0, %s129_s1 }
  0x8b   :  { %p83_p1 = pnand %p81_p0, %p78_p13 }
  0x8d   :  { %86 = shalt.err (!%p83_p1)
}
  0x8e   :  { %34 = dma.vmem_to_hbm [thread:$0]  %s32_s20, 128, %s129_s1, [#allocation4]  }
  0x8f   :  { %89 = dma.done.wait [#allocation4], 128  }
  0x90   :  { %90 = vsyncadd [#allocation4], 4294967168 }
  0x91   :  { %38 = vsyncpa [#allocation3], 1 }
  0x92   :  { %39 = vsyncpa [#allocation4], 1 }

</bundles_post_ra>
